<compile_context>
chip_gen: v7x
topology: tpu7x:2x2x1
jax: 0.10.0
libtpu: 0.0.40
codegen_flags: <defaults>
</compile_context>

<pallas_src>
import functools

import jax
import jax.numpy as jnp
from jax.experimental import pallas as pl
from jax.experimental.pallas import tpu as pltpu


def _round_up(n, m):
    return ((n + m - 1) // m) * m


# ----------------------------------------------------------------------------
# Kernel
# ----------------------------------------------------------------------------
def mlp4_kernel(x_ref, w1_ref, b1_ref, w2_ref, b2_ref, w3_ref, b3_ref,
                w4_ref, b4_ref, o_ref):
    """One batch tile of the fused MLP.

    x_ref:  (TB, F1p)  bf16  (streamed per grid step)
    w*_ref: (Kp, Np)   bf16  (VMEM-resident, same block every step)
    b*_ref: (1, Np)    f32
    o_ref:  (TB, OUTp) f32
    Matmuls run on the MXU in bf16 with f32 accumulation; the bias-add / tanh
    chain stays in f32 (v5e has no bf16 VPU/EUP path); operands are downcast to
    bf16 only right before each dot.
    """
    h = x_ref[...]  # bf16
    h = jnp.tanh(
        jnp.dot(h, w1_ref[...], preferred_element_type=jnp.float32) + b1_ref[...])
    h = jnp.tanh(
        jnp.dot(h.astype(jnp.bfloat16), w2_ref[...],
                preferred_element_type=jnp.float32) + b2_ref[...])
    h = jnp.tanh(
        jnp.dot(h.astype(jnp.bfloat16), w3_ref[...],
                preferred_element_type=jnp.float32) + b3_ref[...])
    out = jnp.dot(h.astype(jnp.bfloat16), w4_ref[...],
                  preferred_element_type=jnp.float32) + b4_ref[...]
    o_ref[...] = out.astype(o_ref.dtype)


# ----------------------------------------------------------------------------
# One-time parameter preparation (outside the jitted hot path)
# ----------------------------------------------------------------------------
def prepare_params(params, lane_multiple=128):
    """PyTorch-convention (out,in) W / (out,) b  ->  padded (in_p,out_p) bf16 W,
    (1,out_p) f32 b.  Padding is zero, so padded columns stay exactly zero
    through tanh and contribute nothing downstream.
    lane_multiple=256 fills the v6e/v7x 256x256 MXUs better for larger models.
    """
    prepared = {}
    for i in (1, 2, 3, 4):
        w = params[f"w{i}"]                      # (out, in)
        b = params[f"b{i}"]                      # (out,)
        out_f, in_f = w.shape
        in_p = _round_up(in_f, lane_multiple)
        out_p = _round_up(out_f, lane_multiple)
        wt = jnp.zeros((in_p, out_p), jnp.bfloat16)
        wt = wt.at[:in_f, :out_f].set(w.T.astype(jnp.bfloat16))
        bp = jnp.zeros((1, out_p), jnp.float32).at[0, :out_f].set(b)
        prepared[f"w{i}"] = wt
        prepared[f"b{i}"] = bp
    return prepared


# ----------------------------------------------------------------------------
# Forward
# ----------------------------------------------------------------------------
@functools.partial(jax.jit, static_argnames=("out_size",))
def mlp4_forward(x, w1, b1, w2, b2, w3, b3, w4, b4, *, out_size):
    """x: (B, input_size) f32.  w*/b* from prepare_params().  Returns (B, out_size) f32."""
    B, F = x.shape
    F1p = w1.shape[0]
    OUTp = w4.shape[1]

    # Batch tile: up to 256 rows per grid step (sublane-aligned), batch padded
    # to a whole number of tiles.  At tiny B this degenerates to one step.
    TB = min(256, _round_up(B, 8))
    Bp = _round_up(B, TB)
    grid = (Bp // TB,)

    # Pad + downcast the streamed input once (zeros in padded rows/cols).
    xp = jnp.zeros((Bp, F1p), jnp.bfloat16).at[:B, :F].set(x.astype(jnp.bfloat16))

    dims = [(w.shape[0], w.shape[1]) for w in (w1, w2, w3, w4)]  # (Kp, Np) per layer

    # Advisory cost estimate for XLA's scheduler.
    flops = 2 * Bp * sum(k * n for k, n in dims)
    transcendentals = Bp * sum(n for _, n in dims[:3])           # three tanh layers
    bytes_accessed = (xp.size * 2
                      + sum(2 * k * n for k, n in dims)
                      + sum(4 * n for _, n in dims)
                      + Bp * OUTp * 4)
    cost = pl.CostEstimate(flops=flops, transcendentals=transcendentals,
                           bytes_accessed=bytes_accessed)

    # VMEM budget: resident weights/biases + double-buffered x/out tiles +
    # intermediates, with headroom; capped below v7x's 64 MiB physical VMEM.
    weight_bytes = sum(2 * k * n for k, n in dims) + sum(4 * n for _, n in dims)
    tile_bytes = 2 * (TB * F1p * 2 + TB * OUTp * 4)
    interm_bytes = 4 * TB * max(n for _, n in dims) * 3
    vmem_limit = int(1.5 * (weight_bytes + tile_bytes + interm_bytes)) + (4 << 20)
    vmem_limit = min(max(vmem_limit, 16 << 20), 60 << 20)

    resident = lambda shape: pl.BlockSpec(shape, lambda i: (0, 0))

    out_padded = pl.pallas_call(
        mlp4_kernel,
        out_shape=jax.ShapeDtypeStruct((Bp, OUTp), jnp.float32),
        grid=grid,
        in_specs=[
            pl.BlockSpec((TB, F1p), lambda i: (i, 0)),   # x: streamed per tile
            resident(w1.shape), resident(b1.shape),
            resident(w2.shape), resident(b2.shape),
            resident(w3.shape), resident(b3.shape),
            resident(w4.shape), resident(b4.shape),
        ],
        out_specs=pl.BlockSpec((TB, OUTp), lambda i: (i, 0)),
        compiler_params=pltpu.CompilerParams(
            dimension_semantics=("parallel",),
            vmem_limit_bytes=vmem_limit,
        ),
        cost_estimate=cost,
    )(xp, w1, b1, w2, b2, w3, b3, w4, b4)

    return out_padded[:B, :out_size]


# ----------------------------------------------------------------------------
# Init (PyTorch nn.Linear convention) + f32 reference
# ----------------------------------------------------------------------------
def init_params(key, input_size, output_size, hidden_size):
    """Deterministic PyTorch-style init: U(-1/sqrt(fan_in), 1/sqrt(fan_in))."""
    dims = [
        (input_size, hidden_size * 2),       # fc1
        (hidden_size * 2, hidden_size * 2),  # fc2
        (hidden_size * 2, hidden_size),      # fc3
        (hidden_size, output_size),          # fc4
    ]
    params = {}
    for i, (fan_in, fan_out) in enumerate(dims, start=1):
        key, kw, kb = jax.random.split(key, 3)
        bound = 1.0 / jnp.sqrt(jnp.float32(fan_in))
        params[f"w{i}"] = jax.random.uniform(
            kw, (fan_out, fan_in), jnp.float32, -bound, bound)  # (out, in) like torch
        params[f"b{i}"] = jax.random.uniform(
            kb, (fan_out,), jnp.float32, -bound, bound)
    return params


def mlp4_reference(x, params):
    h = jnp.tanh(x @ params["w1"].T + params["b1"])
    h = jnp.tanh(h @ params["w2"].T + params["b2"])
    h = jnp.tanh(h @ params["w3"].T + params["b3"])
    return h @ params["w4"].T + params["b4"]


if __name__ == "__main__":
    key = jax.random.PRNGKey(0)
    B, input_size, hidden_size, output_size = 8, 32, 32, 16

    kx, kp = jax.random.split(key)
    x = jax.random.normal(kx, (B, input_size), jnp.float32)
    params = init_params(kp, input_size, output_size, hidden_size)

    prepared = prepare_params(params)  # one-time transpose / pad / bf16 cast
    out = mlp4_forward(
        x,
        prepared["w1"], prepared["b1"], prepared["w2"], prepared["b2"],
        prepared["w3"], prepared["b3"], prepared["w4"], prepared["b4"],
        out_size=output_size)
    out = jax.block_until_ready(out)

    ref = mlp4_reference(x, params)
    assert out.shape == (B, output_size), out.shape
    # bf16 matmul operands (f32 accumulation) -> loosened tolerance vs f32 ref.
    assert jnp.allclose(out, ref, atol=2e-2, rtol=2e-2), "mismatch vs reference"
    print("KERNEL_OK")
</pallas_src>

<mosaic_0001>
module attributes {stable_mosaic.version = 11 : i64} {
  func.func @mlp4_kernel(%arg0: i32, %arg1: memref<8x128xbf16, #tpu.memory_space<vmem>>, %arg2: memref<128x128xbf16, #tpu.memory_space<vmem>>, %arg3: memref<1x128xf32, #tpu.memory_space<vmem>>, %arg4: memref<128x128xbf16, #tpu.memory_space<vmem>>, %arg5: memref<1x128xf32, #tpu.memory_space<vmem>>, %arg6: memref<128x128xbf16, #tpu.memory_space<vmem>>, %arg7: memref<1x128xf32, #tpu.memory_space<vmem>>, %arg8: memref<128x128xbf16, #tpu.memory_space<vmem>>, %arg9: memref<1x128xf32, #tpu.memory_space<vmem>>, %arg10: memref<8x128xf32, #tpu.memory_space<vmem>>) attributes {dimension_semantics = [#tpu.dimension_semantics<parallel>], iteration_bounds = array<i64: 1>, scalar_prefetch = 0 : i64, scratch_operands = 0 : i64, tpu.core_type = #tpu.core_type<tc>, window_params = [{transform_indices = @transform_0, window_bounds = array<i64: 8, 128>}, {pipeline_mode = #tpu.pipeline_mode<synchronous>, transform_indices = @transform_1, window_bounds = array<i64: 128, 128>}, {pipeline_mode = #tpu.pipeline_mode<synchronous>, transform_indices = @transform_2, window_bounds = array<i64: 1, 128>}, {pipeline_mode = #tpu.pipeline_mode<synchronous>, transform_indices = @transform_3, window_bounds = array<i64: 128, 128>}, {pipeline_mode = #tpu.pipeline_mode<synchronous>, transform_indices = @transform_4, window_bounds = array<i64: 1, 128>}, {pipeline_mode = #tpu.pipeline_mode<synchronous>, transform_indices = @transform_5, window_bounds = array<i64: 128, 128>}, {pipeline_mode = #tpu.pipeline_mode<synchronous>, transform_indices = @transform_6, window_bounds = array<i64: 1, 128>}, {pipeline_mode = #tpu.pipeline_mode<synchronous>, transform_indices = @transform_7, window_bounds = array<i64: 128, 128>}, {pipeline_mode = #tpu.pipeline_mode<synchronous>, transform_indices = @transform_8, window_bounds = array<i64: 1, 128>}, {transform_indices = @transform_9, window_bounds = array<i64: 8, 128>}]} {
    %c0 = arith.constant 0 : index
    %c0_0 = arith.constant 0 : index
    %0 = vector.load %arg1[%c0, %c0_0] : memref<8x128xbf16, #tpu.memory_space<vmem>>, vector<8x128xbf16>
    %c0_1 = arith.constant 0 : index
    %c0_2 = arith.constant 0 : index
    %1 = vector.load %arg2[%c0_1, %c0_2] : memref<128x128xbf16, #tpu.memory_space<vmem>>, vector<128x128xbf16>
    %cst = arith.constant dense<0.000000e+00> : vector<8x128xf32>
    %2 = tpu.matmul %0, %1, %cst {dimension_numbers = #tpu.dot_dimension_numbers<[1], [0], [0], [1], [0, 0, 1, 1], [], []>} : vector<8x128xbf16>, vector<128x128xbf16>, vector<8x128xf32> -> vector<8x128xf32>
    %c0_3 = arith.constant 0 : index
    %c0_4 = arith.constant 0 : index
    %3 = vector.load %arg3[%c0_3, %c0_4] : memref<1x128xf32, #tpu.memory_space<vmem>>, vector<1x128xf32>
    %4 = vector.broadcast %3 : vector<1x128xf32> to vector<8x128xf32>
    %5 = arith.addf %2, %4 : vector<8x128xf32>
    %6 = math.tanh %5 : vector<8x128xf32>
    %7 = arith.truncf %6 : vector<8x128xf32> to vector<8x128xbf16>
    %c0_5 = arith.constant 0 : index
    %c0_6 = arith.constant 0 : index
    %8 = vector.load %arg4[%c0_5, %c0_6] : memref<128x128xbf16, #tpu.memory_space<vmem>>, vector<128x128xbf16>
    %cst_7 = arith.constant dense<0.000000e+00> : vector<8x128xf32>
    %9 = tpu.matmul %7, %8, %cst_7 {dimension_numbers = #tpu.dot_dimension_numbers<[1], [0], [0], [1], [0, 0, 1, 1], [], []>} : vector<8x128xbf16>, vector<128x128xbf16>, vector<8x128xf32> -> vector<8x128xf32>
    %c0_8 = arith.constant 0 : index
    %c0_9 = arith.constant 0 : index
    %10 = vector.load %arg5[%c0_8, %c0_9] : memref<1x128xf32, #tpu.memory_space<vmem>>, vector<1x128xf32>
    %11 = vector.broadcast %10 : vector<1x128xf32> to vector<8x128xf32>
    %12 = arith.addf %9, %11 : vector<8x128xf32>
    %13 = math.tanh %12 : vector<8x128xf32>
    %14 = arith.truncf %13 : vector<8x128xf32> to vector<8x128xbf16>
    %c0_10 = arith.constant 0 : index
    %c0_11 = arith.constant 0 : index
    %15 = vector.load %arg6[%c0_10, %c0_11] : memref<128x128xbf16, #tpu.memory_space<vmem>>, vector<128x128xbf16>
    %cst_12 = arith.constant dense<0.000000e+00> : vector<8x128xf32>
    %16 = tpu.matmul %14, %15, %cst_12 {dimension_numbers = #tpu.dot_dimension_numbers<[1], [0], [0], [1], [0, 0, 1, 1], [], []>} : vector<8x128xbf16>, vector<128x128xbf16>, vector<8x128xf32> -> vector<8x128xf32>
    %c0_13 = arith.constant 0 : index
    %c0_14 = arith.constant 0 : index
    %17 = vector.load %arg7[%c0_13, %c0_14] : memref<1x128xf32, #tpu.memory_space<vmem>>, vector<1x128xf32>
    %18 = vector.broadcast %17 : vector<1x128xf32> to vector<8x128xf32>
    %19 = arith.addf %16, %18 : vector<8x128xf32>
    %20 = math.tanh %19 : vector<8x128xf32>
    %21 = arith.truncf %20 : vector<8x128xf32> to vector<8x128xbf16>
    %c0_15 = arith.constant 0 : index
    %c0_16 = arith.constant 0 : index
    %22 = vector.load %arg8[%c0_15, %c0_16] : memref<128x128xbf16, #tpu.memory_space<vmem>>, vector<128x128xbf16>
    %cst_17 = arith.constant dense<0.000000e+00> : vector<8x128xf32>
    %23 = tpu.matmul %21, %22, %cst_17 {dimension_numbers = #tpu.dot_dimension_numbers<[1], [0], [0], [1], [0, 0, 1, 1], [], []>} : vector<8x128xbf16>, vector<128x128xbf16>, vector<8x128xf32> -> vector<8x128xf32>
    %c0_18 = arith.constant 0 : index
    %c0_19 = arith.constant 0 : index
    %24 = vector.load %arg9[%c0_18, %c0_19] : memref<1x128xf32, #tpu.memory_space<vmem>>, vector<1x128xf32>
    %25 = vector.broadcast %24 : vector<1x128xf32> to vector<8x128xf32>
    %26 = arith.addf %23, %25 : vector<8x128xf32>
    %c0_20 = arith.constant 0 : index
    %c0_21 = arith.constant 0 : index
    %27 = vector.load %arg10[%c0_20, %c0_21] : memref<8x128xf32, #tpu.memory_space<vmem>>, vector<8x128xf32>
    tpu.vector_store %arg10[%c0_20, %c0_21], %26 {strides = array<i32>} : memref<8x128xf32, #tpu.memory_space<vmem>>, vector<8x128xf32>,
    return
  }
  func.func @transform_0(%arg0: i32) -> (i32, i32) {
    %c0_i32 = arith.constant 0 : i32
    %c0_i32_0 = arith.constant 0 : i32
    return %arg0, %c0_i32 : i32, i32
  }
  func.func @transform_1(%arg0: i32) -> (i32, i32) {
    %c0_i32 = arith.constant 0 : i32
    %c0_i32_0 = arith.constant 0 : i32
    %c0_i32_1 = arith.constant 0 : i32
    return %c0_i32, %c0_i32_0 : i32, i32
  }
  func.func @transform_2(%arg0: i32) -> (i32, i32) {
    %c0_i32 = arith.constant 0 : i32
    %c0_i32_0 = arith.constant 0 : i32
    %c0_i32_1 = arith.constant 0 : i32
    return %c0_i32, %c0_i32_0 : i32, i32
  }
  func.func @transform_3(%arg0: i32) -> (i32, i32) {
    %c0_i32 = arith.constant 0 : i32
    %c0_i32_0 = arith.constant 0 : i32
    %c0_i32_1 = arith.constant 0 : i32
    return %c0_i32, %c0_i32_0 : i32, i32
  }
  func.func @transform_4(%arg0: i32) -> (i32, i32) {
    %c0_i32 = arith.constant 0 : i32
    %c0_i32_0 = arith.constant 0 : i32
    %c0_i32_1 = arith.constant 0 : i32
    return %c0_i32, %c0_i32_0 : i32, i32
  }
  func.func @transform_5(%arg0: i32) -> (i32, i32) {
    %c0_i32 = arith.constant 0 : i32
    %c0_i32_0 = arith.constant 0 : i32
    %c0_i32_1 = arith.constant 0 : i32
    return %c0_i32, %c0_i32_0 : i32, i32
  }
  func.func @transform_6(%arg0: i32) -> (i32, i32) {
    %c0_i32 = arith.constant 0 : i32
    %c0_i32_0 = arith.constant 0 : i32
    %c0_i32_1 = arith.constant 0 : i32
    return %c0_i32, %c0_i32_0 : i32, i32
  }
  func.func @transform_7(%arg0: i32) -> (i32, i32) {
    %c0_i32 = arith.constant 0 : i32
    %c0_i32_0 = arith.constant 0 : i32
    %c0_i32_1 = arith.constant 0 : i32
    return %c0_i32, %c0_i32_0 : i32, i32
  }
  func.func @transform_8(%arg0: i32) -> (i32, i32) {
    %c0_i32 = arith.constant 0 : i32
    %c0_i32_0 = arith.constant 0 : i32
    %c0_i32_1 = arith.constant 0 : i32
    return %c0_i32, %c0_i32_0 : i32, i32
  }
  func.func @transform_9(%arg0: i32) -> (i32, i32) {
    %c0_i32 = arith.constant 0 : i32
    %c0_i32_0 = arith.constant 0 : i32
    return %arg0, %c0_i32 : i32, i32
  }
}

</mosaic_0001>

<bundles_post_ra>
// kernel: mlp4_forward.1
= control target key start
LH: loop header
LB: loop body
LE: loop exit
PB: predicated region body
PF: predicated region fallthrough
CT: control target
= control target key end

     0   :  { %14 = vsyncpa [#allocation3], 0  ;;  %s1075_s0 = inlined_call_operand.vmem [shape: bf16[8,128], index: 0, kind: input, shape index: {}]   ;;  %s1076_s1 = inlined_call_operand.hbm [shape: bf16[128,128], index: 1, kind: input, shape index: {}]   ;;  %s1077_s2 = inlined_call_operand.vmem [shape: f32[1,128], index: 2, kind: input, shape index: {}]   ;;  %s1078_s3 = inlined_call_operand.hbm [shape: bf16[128,128], index: 3, kind: input, shape index: {}]   ;;  %s1079_s4 = inlined_call_operand.vmem [shape: f32[1,128], index: 4, kind: input, shape index: {}]   ;;  %s1080_s5 = inlined_call_operand.hbm [shape: bf16[128,128], index: 5, kind: input, shape index: {}]   ;;  %s1081_s6 = inlined_call_operand.vmem [shape: f32[1,128], index: 6, kind: input, shape index: {}]   ;;  %s1082_s7 = inlined_call_operand.hbm [shape: bf16[128,128], index: 7, kind: input, shape index: {}]   ;;  %s1083_s8 = inlined_call_operand.vmem [shape: f32[1,128], index: 8, kind: input, shape index: {}]   ;;  %s1084_s9 = inlined_call_operand.hbm [shape: f32[8,128], index: 9, kind: output, shape index: {}]  }
   0x1   :  { %15 = vsyncpa [#allocation6], 0 }
   0x2   :  { %16 = vsyncpa [#allocation9], 0 }
   0x3   :  { %17 = vsyncpa [#allocation4], 0  ;;  %s875_s30 = smov [#allocation5]   ;;  %s876_s11 = smov [#allocation2]  }
   0x4   :  { %s39_s10 = sshll.u32 %s875_s30, 4  ;;  %s25_s12 = sshll.u32 %s876_s11, 4  ;;  %s40_s10 = int_to_ptr.vmem [resolvable:$true] %s39_s10  ;;  %s934_s12 = int_to_ptr.vmem [resolvable:$true] %s25_s12 }
   0x5   :  { %s757_s15 = scalar_lea.hbm %s1078_s3, 1024 }
   0x6   :  { %p758_p0 = scmp.ne.s32.totalorder %s1078_s3, %s757_s15  ;;  %p761_p1 = scmp.lt.u32.totalorder %s757_s15, %s1078_s3 }
   0x8   :  { %p763_p2 = pnand %p761_p1, %p758_p0 }
   0xa   :  { %766 = shalt.err (!%p763_p2)
}
   0xb   :  { %s767_s20 = scalar_lea.vmem %s40_s10, 1024  ;;  %p772_p4 = scmp.lt.s32.totalorder %s40_s10, %s40_s10 }
   0xc   :  { %p768_p3 = scmp.ne.s32.totalorder %s40_s10, %s767_s20  ;;  %p773_p5 = scmp.lt.s32.totalorder %s767_s20, %s767_s20 }
   0xe   :  { %p774_p6 = por %p773_p5, %p772_p4 }
  0x10   :  { %p775_p7 = pnand %p774_p6, %p768_p3 }
  0x12   :  { %778 = shalt.err (!%p775_p7)
}
  0x13   :  { %s877_s21 = smov 64   ;;  %s878_s22 = smov 4  }
  0x14   :  { %45 = dma.hbm_to_vmem [thread:$0]  %s1078_s3, 1024, %s40_s10, [#allocation6], %s877_s21, %s877_s21, %s878_s22  }
  0x15   :  { %s779_s27 = scalar_lea.hbm %s1076_s1, 1024 }
  0x16   :  { %p780_p8 = scmp.ne.s32.totalorder %s1076_s1, %s779_s27  ;;  %p783_p9 = scmp.lt.u32.totalorder %s779_s27, %s1076_s1 }
  0x18   :  { %p785_p10 = pnand %p783_p9, %p780_p8 }
  0x1a   :  { %788 = shalt.err (!%p785_p10)
}
  0x1b   :  { %s789_s13 = scalar_lea.vmem %s934_s12, 1024  ;;  %p794_p12 = scmp.lt.s32.totalorder %s934_s12, %s934_s12 }
  0x1c   :  { %p790_p11 = scmp.ne.s32.totalorder %s934_s12, %s789_s13  ;;  %p795_p13 = scmp.lt.s32.totalorder %s789_s13, %s789_s13 }
  0x1e   :  { %p796_p0 = por %p795_p13, %p794_p12 }
  0x20   :  { %p797_p1 = pnand %p796_p0, %p790_p11 }
  0x22   :  { %800 = shalt.err (!%p797_p1)
}
  0x23   :  { %31 = dma.hbm_to_vmem [thread:$0]  %s1076_s1, 1024, %s934_s12, [#allocation3], %s877_s21, %s877_s21, %s878_s22  }
  0x24   :  { %s879_s14 = smov [#allocation7]   ;;  %s880_s16 = smov [#allocation8]  }
  0x25   :  { %s53_s15 = sshll.u32 %s879_s14, 4  ;;  %s67_s17 = sshll.u32 %s880_s16, 4  ;;  %s54_s15 = int_to_ptr.vmem [resolvable:$true] %s53_s15  ;;  %s971_s17 = int_to_ptr.vmem [resolvable:$true] %s67_s17 }
  0x26   :  { %s801_s20 = scalar_lea.hbm %s1080_s5, 1024 }
  0x27   :  { %p802_p2 = scmp.ne.s32.totalorder %s1080_s5, %s801_s20  ;;  %p805_p3 = scmp.lt.u32.totalorder %s801_s20, %s1080_s5 }
  0x29   :  { %p807_p4 = pnand %p805_p3, %p802_p2 }
  0x2b   :  { %810 = shalt.err (!%p807_p4)
}
  0x2c   :  { %s811_s1 = scalar_lea.vmem %s54_s15, 1024  ;;  %p816_p6 = scmp.lt.s32.totalorder %s54_s15, %s54_s15 }
  0x2d   :  { %p812_p5 = scmp.ne.s32.totalorder %s54_s15, %s811_s1  ;;  %p817_p7 = scmp.lt.s32.totalorder %s811_s1, %s811_s1 }
  0x2f   :  { %p818_p8 = por %p817_p7, %p816_p6 }
  0x31   :  { %p819_p9 = pnand %p818_p8, %p812_p5 }
  0x33   :  { %822 = shalt.err (!%p819_p9)
}
  0x34   :  { %59 = dma.hbm_to_vmem [thread:$0]  %s1080_s5, 1024, %s54_s15, [#allocation6], %s877_s21, %s877_s21, %s878_s22  }
  0x35   :  { %s823_s30 = scalar_lea.hbm %s1082_s7, 1024 }
  0x36   :  { %p824_p10 = scmp.ne.s32.totalorder %s1082_s7, %s823_s30  ;;  %p827_p11 = scmp.lt.u32.totalorder %s823_s30, %s1082_s7 }
  0x38   :  { %p829_p12 = pnand %p827_p11, %p824_p10 }
  0x3a   :  { %832 = shalt.err (!%p829_p12)
}
  0x3b   :  { %s833_s14 = scalar_lea.vmem %s971_s17, 1024  ;;  %p838_p0 = scmp.lt.s32.totalorder %s971_s17, %s971_s17 }
  0x3c   :  { %p834_p13 = scmp.ne.s32.totalorder %s971_s17, %s833_s14  ;;  %p839_p1 = scmp.lt.s32.totalorder %s833_s14, %s833_s14 }
  0x3e   :  { %p840_p2 = por %p839_p1, %p838_p0 }
  0x40   :  { %p841_p3 = pnand %p840_p2, %p834_p13 }
  0x42   :  { %844 = shalt.err (!%p841_p3)
}
  0x43   :  { %73 = dma.hbm_to_vmem [thread:$0]  %s1082_s7, 1024, %s971_s17, [#allocation9], %s877_s21, %s877_s21, %s878_s22  }
  0x44   :  { %867 = dma.done.wait [#allocation3], 1024  }
  0x45   :  { %868 = vsyncadd [#allocation3], 4294966272 }
  0x46   :  { %869 = dma.done.wait [#allocation6], 2048  }
  0x47   :  { %870 = vsyncadd [#allocation6], 4294965248 }
  0x48   :  { %871 = dma.done.wait [#allocation9], 1024  }
  0x49   :  { %872 = vsyncadd [#allocation9], 4294966272  ;;  %v881_v0 = vmov 0.0   ;;  %vm882_vm0 = vmmov 0   ;;  %v719_v1 = vld [vmem:[#allocation2] sm:$0xff]   ;;  %v720_v2 = vld [vmem:[#allocation2 + $0x8] sm:$0xff]  }
  0x4a   :  { %630 = vmatprep.subr.bf16.mxu0 %v881_v0  ;;  %646 = vmatprep.mubr.msk.bf16.mxu0 %vm882_vm0, %v881_v0  ;;  %v721_v3 = vld [vmem:[#allocation2 + $0x10] sm:$0xff]   ;;  %v727_v4 = vld [vmem:[#allocation5] sm:$0xff]   ;;  %v722_v5 = vld [vmem:[#allocation2 + $0x18] sm:$0xff]   ;;  %s883_s20 = smov [#allocation10]  }
  0x4b   :  { %650 = vmatprep.subr.bf16.mxu1 %v881_v0  ;;  %666 = vmatprep.mubr.msk.bf16.mxu1 %vm882_vm0, %v881_v0  ;;  %v728_v6 = vld [vmem:[#allocation5 + $0x8] sm:$0xff]   ;;  %v723_v7 = vld [vmem:[#allocation2 + $0x20] sm:$0xff]   ;;  %v729_v8 = vld [vmem:[#allocation5 + $0x10] sm:$0xff]   ;;  %s547_s23 = sshll.u32 %s883_s20, 4  ;;  %s548_s23 = int_to_ptr.vmem [resolvable:$true] %s547_s23 }
  0x4c   :  { %631 = vmatpush3.bf16.msra.mxu0 %v719_v1  ;;  %651 = vmatpush3.bf16.msra.mxu1 %v727_v4  ;;  %v724_v9 = vld [vmem:[#allocation2 + $0x28] sm:$0xff]   ;;  %v730_v10 = vld [vmem:[#allocation5 + $0x18] sm:$0xff]   ;;  %v725_v11 = vld [vmem:[#allocation2 + $0x30] sm:$0xff]   ;;  %p850_p5 = scmp.lt.s32.totalorder %s548_s23, %s548_s23 }
  0x4d   :  { %632 = vmatprep.subr.bf16.mxu0 %v881_v0  ;;  %652 = vmatprep.subr.bf16.mxu1 %v881_v0  ;;  %v726_v12 = vld [vmem:[#allocation2 + $0x38] sm:$0xff]   ;;  %v89_v13 = vld [vmem:[%s1075_s0] sm:$0xf]  ;;  %v732_v15 = vld [vmem:[#allocation5 + $0x28] sm:$0xff]  }
  0x4e   :  { %v731_v14 = vld [vmem:[#allocation5 + $0x20] sm:$0xff]   ;;  %v733_v16 = vld [vmem:[#allocation5 + $0x30] sm:$0xff]   ;;  %v734_v17 = vld [vmem:[#allocation5 + $0x38] sm:$0xff]  }
  0x4f   :  { %v735_v18 = vld [vmem:[#allocation7] sm:$0xff]   ;;  %v736_v19 = vld [vmem:[#allocation7 + $0x8] sm:$0xff]   ;;  %v737_v20 = vld [vmem:[#allocation7 + $0x10] sm:$0xff]  }
  0x50   :  { %633 = vmatpush3.bf16.msra.mxu0 %v720_v2  ;;  %653 = vmatpush3.bf16.msra.mxu1 %v728_v6  ;;  %v738_v21 = vld [vmem:[#allocation7 + $0x18] sm:$0xff]   ;;  %v558_v22 = vld [vmem:[%s1077_s2] ss:$0 sm:$0xff]  ;;  %v740_v31 = vld [vmem:[#allocation7 + $0x28] sm:$0xff]  }
  0x51   :  { %634 = vmatprep.subr.bf16.mxu0 %v881_v0  ;;  %654 = vmatprep.subr.bf16.mxu1 %v881_v0  ;;  %v739_v30 = vld [vmem:[#allocation7 + $0x20] sm:$0xff]   ;;  %v741_v32 = vld [vmem:[#allocation7 + $0x30] sm:$0xff]   ;;  %v742_v33 = vld [vmem:[#allocation7 + $0x38] sm:$0xff]  }
  0x52   :  { %v743_v34 = vld [vmem:[#allocation8] sm:$0xff]   ;;  %v744_v35 = vld [vmem:[#allocation8 + $0x8] sm:$0xff]   ;;  %v745_v36 = vld [vmem:[#allocation8 + $0x10] sm:$0xff]  }
  0x53   :  { %v746_v37 = vld [vmem:[#allocation8 + $0x18] sm:$0xff]   ;;  %v567_v38 = vld [vmem:[%s1079_s4] ss:$0 sm:$0xff]  ;;  %v748_v47 = vld [vmem:[#allocation8 + $0x28] sm:$0xff]  }
  0x54   :  { %635 = vmatpush3.bf16.msra.mxu0 %v721_v3  ;;  %655 = vmatpush3.bf16.msra.mxu1 %v729_v8  ;;  %v747_v46 = vld [vmem:[#allocation8 + $0x20] sm:$0xff]   ;;  %v749_v48 = vld [vmem:[#allocation8 + $0x30] sm:$0xff]   ;;  %v750_v49 = vld [vmem:[#allocation8 + $0x38] sm:$0xff]  }
  0x55   :  { %636 = vmatprep.subr.bf16.mxu0 %v881_v0  ;;  %656 = vmatprep.subr.bf16.mxu1 %v881_v0  ;;  %v576_v50 = vld [vmem:[%s1081_s6] ss:$0 sm:$0xff]  ;;  %s845_s6 = scalar_lea.vmem %s548_s23, 128 }
  0x56   :  { %v585_v58 = vld [vmem:[%s1083_s8] ss:$0 sm:$0xff]  ;;  %p846_p4 = scmp.ne.s32.totalorder %s548_s23, %s845_s6  ;;  %p851_p6 = scmp.lt.s32.totalorder %s845_s6, %s845_s6 }
  0x58   :  { %637 = vmatpush3.bf16.msra.mxu0 %v722_v5  ;;  %657 = vmatpush3.bf16.msra.mxu1 %v730_v10  ;;  %p852_p7 = por %p851_p6, %p850_p5 }
  0x59   :  { %638 = vmatprep.subr.bf16.mxu0 %v881_v0  ;;  %658 = vmatprep.subr.bf16.mxu1 %v881_v0 }
  0x5a   :  { %p853_p8 = pnand %p852_p7, %p846_p4 }
  0x5c   :  { %639 = vmatpush3.bf16.msra.mxu0 %v723_v7  ;;  %659 = vmatpush3.bf16.msra.mxu1 %v731_v14 }
  0x5d   :  { %640 = vmatprep.subr.bf16.mxu0 %v881_v0  ;;  %660 = vmatprep.subr.bf16.mxu1 %v881_v0 }
  0x60   :  { %641 = vmatpush3.bf16.msra.mxu0 %v724_v9  ;;  %661 = vmatpush3.bf16.msra.mxu1 %v732_v15 }
  0x61   :  { %642 = vmatprep.subr.bf16.mxu0 %v881_v0  ;;  %662 = vmatprep.subr.bf16.mxu1 %v881_v0 }
  0x64   :  { %643 = vmatpush3.bf16.msra.mxu0 %v725_v11  ;;  %663 = vmatpush3.bf16.msra.mxu1 %v733_v16 }
  0x65   :  { %644 = vmatprep.subr.bf16.mxu0 %v881_v0  ;;  %664 = vmatprep.subr.bf16.mxu1 %v881_v0 }
  0x68   :  { %645 = vmatpush3.bf16.msra.mxu0 %v726_v12  ;;  %665 = vmatpush3.bf16.msra.mxu1 %v734_v17 }
  0x69   :  { %670 = vmatprep.subr.bf16.mxu0 %v881_v0  ;;  %690 = vmatprep.subr.bf16.mxu1 %v881_v0 }
  0x6b   :  { %647 = vmatmul.mubr.bf16.vlgmr.msra.gmra.mrb[0].mxu0 %v89_v13 }
  0x6c   :  { %686 = vmatprep.mubr.msk.bf16.mxu0 %vm882_vm0, %v881_v0  ;;  %671 = vmatpush3.bf16.msra.mxu0 %v735_v18 }
  0x6d   :  { %672 = vmatprep.subr.bf16.mxu0 %v881_v0 }
  0x70   :  { %673 = vmatpush3.bf16.msra.mxu0 %v736_v19 }
  0x71   :  { %674 = vmatprep.subr.bf16.mxu0 %v881_v0 }
  0x74   :  { %675 = vmatpush3.bf16.msra.mxu0 %v737_v20 }
  0x75   :  { %676 = vmatprep.subr.bf16.mxu0 %v881_v0 }
  0x78   :  { %677 = vmatpush3.bf16.msra.mxu0 %v738_v21 }
  0x79   :  { %678 = vmatprep.subr.bf16.mxu0 %v881_v0 }
  0x7c   :  { %679 = vmatpush3.bf16.msra.mxu0 %v739_v30 }
  0x7d   :  { %680 = vmatprep.subr.bf16.mxu0 %v881_v0 }
  0x80   :  { %681 = vmatpush3.bf16.msra.mxu0 %v740_v31 }
  0x81   :  { %682 = vmatprep.subr.bf16.mxu0 %v881_v0 }
  0x84   :  { %683 = vmatpush3.bf16.msra.mxu0 %v741_v32 }
  0x85   :  { %684 = vmatprep.subr.bf16.mxu0 %v881_v0 }
  0x88   :  { %685 = vmatpush3.bf16.msra.mxu0 %v742_v33 }
 0x13e   :  { %v195_v23 = vpop.f32.mrb[0].mxu0 }
 0x13f   :  { %v196_v24 = vadd.f32 %v558_v22, %v195_v23  ;;  %v648_v25 = vpop.f32.mrb[1].mxu0 }
 0x140   :  { %v198_v26 = vpop.f32.mrb[2].mxu0 }
 0x141   :  { %751 = vtanh.f32 %v196_v24  ;;  %v649_v27 = vpop.f32.mrb[3].mxu0 }
 0x14b   :  { %v752_v28 = vpop.eup %751 }
 0x14c   :  { %v202_v29 = vpack.c.bf16 %v752_v28, %v752_v28 }
 0x14e   :  { %667 = vmatmul.mubr.bf16.vlgmr.msra.gmra.mrb[0].mxu1 %v202_v29 }
 0x14f   :  { %706 = vmatprep.mubr.msk.bf16.mxu1 %vm882_vm0, %v881_v0  ;;  %691 = vmatpush3.bf16.msra.mxu1 %v743_v34 }
 0x150   :  { %692 = vmatprep.subr.bf16.mxu1 %v881_v0 }
 0x153   :  { %693 = vmatpush3.bf16.msra.mxu1 %v744_v35 }
 0x154   :  { %694 = vmatprep.subr.bf16.mxu1 %v881_v0 }
 0x157   :  { %695 = vmatpush3.bf16.msra.mxu1 %v745_v36 }
 0x158   :  { %696 = vmatprep.subr.bf16.mxu1 %v881_v0 }
 0x15b   :  { %697 = vmatpush3.bf16.msra.mxu1 %v746_v37 }
 0x15c   :  { %698 = vmatprep.subr.bf16.mxu1 %v881_v0 }
 0x15f   :  { %699 = vmatpush3.bf16.msra.mxu1 %v747_v46 }
 0x160   :  { %700 = vmatprep.subr.bf16.mxu1 %v881_v0 }
 0x163   :  { %701 = vmatpush3.bf16.msra.mxu1 %v748_v47 }
 0x164   :  { %702 = vmatprep.subr.bf16.mxu1 %v881_v0 }
 0x167   :  { %703 = vmatpush3.bf16.msra.mxu1 %v749_v48 }
 0x168   :  { %704 = vmatprep.subr.bf16.mxu1 %v881_v0 }
 0x16b   :  { %705 = vmatpush3.bf16.msra.mxu1 %v750_v49 }
 0x221   :  { %v308_v39 = vpop.f32.mrb[0].mxu1 }
 0x222   :  { %v309_v40 = vadd.f32 %v567_v38, %v308_v39  ;;  %v668_v41 = vpop.f32.mrb[1].mxu1 }
 0x223   :  { %v311_v42 = vpop.f32.mrb[2].mxu1 }
 0x224   :  { %753 = vtanh.f32 %v309_v40  ;;  %v669_v43 = vpop.f32.mrb[3].mxu1 }
 0x22e   :  { %v754_v44 = vpop.eup %753 }
 0x22f   :  { %v315_v45 = vpack.c.bf16 %v754_v44, %v754_v44 }
 0x231   :  { %687 = vmatmul.mubr.bf16.vlgmr.msra.gmra.mrb[4].mxu0 %v315_v45 }
 0x304   :  { %v421_v51 = vpop.f32.mrb[4].mxu0 }
 0x305   :  { %v422_v52 = vadd.f32 %v576_v50, %v421_v51  ;;  %v688_v53 = vpop.f32.mrb[5].mxu0 }
 0x306   :  { %v424_v54 = vpop.f32.mrb[6].mxu0 }
 0x307   :  { %755 = vtanh.f32 %v422_v52  ;;  %v689_v55 = vpop.f32.mrb[7].mxu0 }
 0x311   :  { %v756_v56 = vpop.eup %755 }
 0x312   :  { %v428_v57 = vpack.c.bf16 %v756_v56, %v756_v56 }
 0x314   :  { %707 = vmatmul.mubr.bf16.vlgmr.msra.gmra.mrb[4].mxu1 %v428_v57 }
 0x3e7   :  { %v534_v59 = vpop.f32.mrb[4].mxu1 }
 0x3e8   :  { %v535_v60 = vadd.f32 %v585_v58, %v534_v59  ;;  %v708_v61 = vpop.f32.mrb[5].mxu1 }
 0x3e9   :  { %v537_v62 = vpop.f32.mrb[6].mxu1 }
 0x3ea   :  { %540 = vst [vmem:[#allocation10] sm:$0xff] %v535_v60  ;;  %v709_v63 = vpop.f32.mrb[7].mxu1 }
 0x3eb   :  { %856 = shalt.err (!%p853_p8)
}
 0x3ec   :  { %s857_s8 = scalar_lea.hbm %s1084_s9, 128 }
 0x3ed   :  { %p858_p9 = scmp.ne.s32.totalorder %s1084_s9, %s857_s8  ;;  %p861_p10 = scmp.lt.u32.totalorder %s857_s8, %s1084_s9 }
 0x3ef   :  { %p863_p11 = pnand %p861_p10, %p858_p9 }
 0x3f1   :  { %866 = shalt.err (!%p863_p11)
}
 0x3f2   :  { %550 = dma.vmem_to_hbm [thread:$0]  %s548_s23, 128, %s1084_s9, [#allocation4]  }
 0x3f3   :  { %873 = dma.done.wait [#allocation4], 128  }
 0x3f4   :  { %874 = vsyncadd [#allocation4], 4294967168 }
 0x3f5   :  { %554 = vsyncpa [#allocation3], 1 }
 0x3f6   :  { %555 = vsyncpa [#allocation6], 1 }
 0x3f7   :  { %556 = vsyncpa [#allocation9], 1 }
 0x3f8   :  { %557 = vsyncpa [#allocation4], 1 }

</bundles_post_ra>
